<compile_context>
chip_gen: v7x
topology: tpu7x:2x2x1
jax: 0.10.0
libtpu: 0.0.40
codegen_flags: <defaults>
</compile_context>

<pallas_src>
import functools

import jax
import jax.numpy as jnp
from jax import lax
from jax.experimental import pallas as pl
from jax.experimental.pallas import tpu as pltpu


def _round_up(x: int, m: int) -> int:
    return (x + m - 1) // m * m


# Taylor/odd-even polynomials in z = theta^2 for |theta| <= pi/2.
# Max abs error ~1.5e-7 (sin) / ~1.6e-8 (cos) -- at the f32 noise floor.
_SIN_COEFFS = (-2.5052108385441718e-08, 2.7557319223985893e-06,
               -1.9841269841269841e-04, 8.3333333333333332e-03,
               -1.6666666666666666e-01)
_COS_COEFFS = (2.0876756987868099e-09, -2.7557319223985888e-07,
               2.4801587301587302e-05, -1.3888888888888889e-03,
               4.1666666666666664e-02, -5.0e-01)


def _fourier_kernel(x_ref, b_ref, out_ref, *, mapping_size: int):
    # x_ref:   (tile, in_dim)   input rows (ragged last block: OOB rows are junk
    #                            but only feed OOB output rows, which are dropped)
    # b_ref:   (in_dim, M)      UNSCALED B (resident, tiny)
    # out_ref: (tile, 2*M)      sin in lanes [0, M), cos in lanes [M, 2M)
    x = x_ref[...].astype(jnp.float32)
    b = b_ref[...].astype(jnp.float32)
    in_dim = x.shape[1]

    # Phase in *turns*: t = x @ B (the PyTorch x_proj is 2*pi*t). K = in_dim is
    # tiny, so VPU broadcast multiply-accumulates are exact f32 and avoid the MXU.
    t = x[:, 0:1] * b[0:1, :]
    for k in range(1, in_dim):
        t = t + x[:, k:k + 1] * b[k:k + 1, :]

    # --- shared range reduction (serves both sin and cos) ---------------------
    u = t - jnp.round(t)                  # fractional turns in [-0.5, 0.5] (exact)
    n = jnp.round(2.0 * u)                # nearest half-turn: {-1, 0, +1}
    v = u - 0.5 * n                       # [-0.25, 0.25] turns
    sgn = 1.0 - 2.0 * jnp.abs(n)          # cos(pi*n) = +/-1
    theta = (2.0 * jnp.pi) * v            # [-pi/2, pi/2]
    z = theta * theta

    s = _SIN_COEFFS[0]
    for cf in _SIN_COEFFS[1:]:
        s = s * z + cf
    s = theta + theta * (z * s)           # sin(theta)

    c = _COS_COEFFS[0]
    for cf in _COS_COEFFS[1:]:
        c = c * z + cf
    c = 1.0 + z * c                       # cos(theta)

    # sin(2*pi*t) = sgn*sin(theta), cos(2*pi*t) = sgn*cos(theta).
    # Direct lane-aligned half-tile stores (M % 128 == 0 -> unmasked vst);
    # no concatenated (tile, 2M) intermediate.
    out_ref[:, :mapping_size] = (sgn * s).astype(out_ref.dtype)
    out_ref[:, mapping_size:] = (sgn * c).astype(out_ref.dtype)


# Conservative per-step VMEM budget: safe on v5e/v6e (128 MiB) and v7x (64 MiB).
_VMEM_BUDGET_BYTES = 40 * 1024 * 1024


def fourier_embedding(x: jax.Array, B: jax.Array, *, tile_n: int = 2048,
                      out_dtype=None) -> jax.Array:
    """concat(sin(2*pi*x@B), cos(2*pi*x@B)).  x: (..., in_dim), B: (in_dim, M).

    `out_dtype` defaults to x.dtype; pass jnp.bfloat16 to halve output HBM
    traffic where the kernel is memory-bound (e.g. v5e).
    """
    in_dim, M = B.shape
    assert x.shape[-1] == in_dim, (x.shape, B.shape)
    assert M % 128 == 0, "mapping_size must be a multiple of 128 (lane-aligned halves)"

    out_dtype = x.dtype if out_dtype is None else jnp.dtype(out_dtype)
    lead = x.shape[:-1]
    x2 = x.reshape(-1, in_dim)
    N = x2.shape[0]
    b = B.astype(x.dtype)                 # mirror PyTorch's B.to(x.dtype)

    x_isz = jnp.dtype(x.dtype).itemsize
    o_isz = jnp.dtype(out_dtype).itemsize
    # Sublane packing factor: 8 for 4-byte dtypes, 16 for bf16, 32 for int8/fp8.
    sub = max(8, 32 // x_isz, 32 // o_isz)

    # Per-row VMEM: out double-buffer + lane-padded x double-buffer (in_dim pads
    # to 128 lanes) + allowance for f32 elementwise temporaries.
    per_row = 2 * (2 * M) * o_isz + 2 * 128 * x_isz + 6 * M * 4
    tile_cap = max(sub, (_VMEM_BUDGET_BYTES - (2 << 20)) // per_row // sub * sub)

    # Big tiles amortize the ~0.35us/step overhead; keep >= 2 grid steps when N
    # allows so the "parallel" row axis can shard across v7x's two TensorCores.
    tile = min(int(tile_n), tile_cap, _round_up(pl.cdiv(N, 2), sub))
    tile = max(sub, _round_up(tile, sub))
    grid = (pl.cdiv(N, tile),)            # ragged last block: OOB rows dropped

    vmem_limit = int(min(max(per_row * tile + (2 << 20), 16 << 20),
                         _VMEM_BUDGET_BYTES))

    out = pl.pallas_call(
        functools.partial(_fourier_kernel, mapping_size=M),
        out_shape=jax.ShapeDtypeStruct((N, 2 * M), out_dtype),
        grid_spec=pltpu.PrefetchScalarGridSpec(
            num_scalar_prefetch=0,
            grid=grid,
            in_specs=[
                # x tile: (tile, in_dim); in_dim equals the full array dim -> OK.
                pl.BlockSpec((tile, in_dim), lambda i: (i, 0)),
                # B is tiny and reused every step: full block, constant index
                # (stays resident in VMEM across grid steps).
                pl.BlockSpec((in_dim, M), lambda i: (0, 0)),
            ],
            out_specs=pl.BlockSpec((tile, 2 * M), lambda i: (i, 0)),
        ),
        compiler_params=pltpu.CompilerParams(
            dimension_semantics=("parallel",),
            vmem_limit_bytes=vmem_limit,
        ),
        cost_estimate=pl.CostEstimate(
            flops=2 * N * in_dim * M,
            transcendentals=2 * N * M,
            bytes_accessed=N * in_dim * x_isz + in_dim * M * x_isz
                           + N * 2 * M * o_isz,
        ),
    )(x2, b)

    return out.reshape(*lead, 2 * M)


def fourier_embedding_ref(x, B):
    # Faithful to the PyTorch forward (f32 math): 2*pi*(x@B), concat(sin, cos).
    # precision=HIGHEST so the reference matmul is actually f32 quality (the TPU
    # default would truncate operands to bf16, which torch does not do).
    x_proj = 2.0 * jnp.pi * jnp.dot(x, B.astype(x.dtype),
                                    precision=lax.Precision.HIGHEST)
    return jnp.concatenate([jnp.sin(x_proj), jnp.cos(x_proj)], axis=-1)


if __name__ == "__main__":
    # Module config (synthetic, deterministic init — no checkpoint load).
    in_dim = 4
    mapping_size = 128
    scale = 10.0

    key = jax.random.PRNGKey(0)
    k_b, k_x = jax.random.split(key)

    # register_buffer('B', torch.randn(in_dim, mapping_size) * scale)
    B = jax.random.normal(k_b, (in_dim, mapping_size), dtype=jnp.float32) * scale

    ok = True
    # N=16: multi-step exact grid; N=300: ragged last block (OOB rows dropped).
    for idx, N in enumerate((16, 300)):
        x = jax.random.normal(jax.random.fold_in(k_x, idx), (N, in_dim),
                              dtype=jnp.float32)

        out = jax.block_until_ready(fourier_embedding(x, B))
        ref = fourier_embedding_ref(x, B)

        assert out.shape == (N, 2 * mapping_size), out.shape
        # In-kernel reduction is done in exact "turns" (t - round(t)), so typical
        # agreement with the f32 reference is ~1e-4 or better; 1e-3 leaves margin
        # for the different matmul summation orders.
        ok &= bool(jnp.allclose(out, ref, atol=1e-3, rtol=1e-3))

    assert ok, "mismatch vs reference"
    print("KERNEL_OK")
</pallas_src>

<mosaic_0001>
module attributes {stable_mosaic.version = 11 : i64} {
  func.func @_fourier_kernel(%arg0: i32, %arg1: memref<8x4xf32, #tpu.memory_space<vmem>>, %arg2: memref<4x128xf32, #tpu.memory_space<vmem>>, %arg3: memref<8x256xf32, #tpu.memory_space<vmem>>) attributes {dimension_semantics = [#tpu.dimension_semantics<parallel>], iteration_bounds = array<i64: 2>, scalar_prefetch = 0 : i64, scratch_operands = 0 : i64, tpu.core_type = #tpu.core_type<tc>, window_params = [{transform_indices = @transform_0, window_bounds = array<i64: 8, 4>}, {pipeline_mode = #tpu.pipeline_mode<synchronous>, transform_indices = @transform_1, window_bounds = array<i64: 4, 128>}, {transform_indices = @transform_2, window_bounds = array<i64: 8, 256>}]} {
    %c0 = arith.constant 0 : index
    %c0_0 = arith.constant 0 : index
    %0 = vector.load %arg1[%c0, %c0_0] : memref<8x4xf32, #tpu.memory_space<vmem>>, vector<8x4xf32>
    %c0_1 = arith.constant 0 : index
    %c0_2 = arith.constant 0 : index
    %1 = vector.load %arg2[%c0_1, %c0_2] : memref<4x128xf32, #tpu.memory_space<vmem>>, vector<4x128xf32>
    %2 = vector.extract_strided_slice %0 {offsets = [0, 0], sizes = [8, 1], strides = [1, 1]} : vector<8x4xf32> to vector<8x1xf32>
    %3 = vector.extract_strided_slice %1 {offsets = [0, 0], sizes = [1, 128], strides = [1, 1]} : vector<4x128xf32> to vector<1x128xf32>
    %4 = vector.broadcast %2 : vector<8x1xf32> to vector<8x128xf32>
    %5 = vector.broadcast %3 : vector<1x128xf32> to vector<8x128xf32>
    %6 = arith.mulf %4, %5 : vector<8x128xf32>
    %7 = vector.extract_strided_slice %0 {offsets = [0, 1], sizes = [8, 1], strides = [1, 1]} : vector<8x4xf32> to vector<8x1xf32>
    %8 = vector.extract_strided_slice %1 {offsets = [1, 0], sizes = [1, 128], strides = [1, 1]} : vector<4x128xf32> to vector<1x128xf32>
    %9 = vector.broadcast %7 : vector<8x1xf32> to vector<8x128xf32>
    %10 = vector.broadcast %8 : vector<1x128xf32> to vector<8x128xf32>
    %11 = arith.mulf %9, %10 : vector<8x128xf32>
    %12 = arith.addf %6, %11 : vector<8x128xf32>
    %13 = vector.extract_strided_slice %0 {offsets = [0, 2], sizes = [8, 1], strides = [1, 1]} : vector<8x4xf32> to vector<8x1xf32>
    %14 = vector.extract_strided_slice %1 {offsets = [2, 0], sizes = [1, 128], strides = [1, 1]} : vector<4x128xf32> to vector<1x128xf32>
    %15 = vector.broadcast %13 : vector<8x1xf32> to vector<8x128xf32>
    %16 = vector.broadcast %14 : vector<1x128xf32> to vector<8x128xf32>
    %17 = arith.mulf %15, %16 : vector<8x128xf32>
    %18 = arith.addf %12, %17 : vector<8x128xf32>
    %19 = vector.extract_strided_slice %0 {offsets = [0, 3], sizes = [8, 1], strides = [1, 1]} : vector<8x4xf32> to vector<8x1xf32>
    %20 = vector.extract_strided_slice %1 {offsets = [3, 0], sizes = [1, 128], strides = [1, 1]} : vector<4x128xf32> to vector<1x128xf32>
    %21 = vector.broadcast %19 : vector<8x1xf32> to vector<8x128xf32>
    %22 = vector.broadcast %20 : vector<1x128xf32> to vector<8x128xf32>
    %23 = arith.mulf %21, %22 : vector<8x128xf32>
    %24 = arith.addf %18, %23 : vector<8x128xf32>
    %25 = math.roundeven %24 : vector<8x128xf32>
    %26 = arith.subf %24, %25 : vector<8x128xf32>
    %cst = arith.constant 2.000000e+00 : f32
    %27 = vector.broadcast %cst : f32 to vector<8x128xf32>
    %28 = arith.mulf %27, %26 : vector<8x128xf32>
    %29 = math.roundeven %28 : vector<8x128xf32>
    %cst_3 = arith.constant 5.000000e-01 : f32
    %30 = vector.broadcast %cst_3 : f32 to vector<8x128xf32>
    %31 = arith.mulf %30, %29 : vector<8x128xf32>
    %32 = arith.subf %26, %31 : vector<8x128xf32>
    %33 = math.absf %29 : vector<8x128xf32>
    %cst_4 = arith.constant 2.000000e+00 : f32
    %34 = vector.broadcast %cst_4 : f32 to vector<8x128xf32>
    %35 = arith.mulf %34, %33 : vector<8x128xf32>
    %cst_5 = arith.constant 1.000000e+00 : f32
    %36 = vector.broadcast %cst_5 : f32 to vector<8x128xf32>
    %37 = arith.subf %36, %35 : vector<8x128xf32>
    %cst_6 = arith.constant 6.28318548 : f32
    %38 = vector.broadcast %cst_6 : f32 to vector<8x128xf32>
    %39 = arith.mulf %38, %32 : vector<8x128xf32>
    %40 = arith.mulf %39, %39 : vector<8x128xf32>
    %cst_7 = arith.constant -2.50521079E-8 : f32
    %41 = vector.broadcast %cst_7 : f32 to vector<8x128xf32>
    %42 = arith.mulf %41, %40 : vector<8x128xf32>
    %cst_8 = arith.constant 2.75573188E-6 : f32
    %43 = vector.broadcast %cst_8 : f32 to vector<8x128xf32>
    %44 = arith.addf %42, %43 : vector<8x128xf32>
    %45 = arith.mulf %44, %40 : vector<8x128xf32>
    %cst_9 = arith.constant -1.98412701E-4 : f32
    %46 = vector.broadcast %cst_9 : f32 to vector<8x128xf32>
    %47 = arith.addf %45, %46 : vector<8x128xf32>
    %48 = arith.mulf %47, %40 : vector<8x128xf32>
    %cst_10 = arith.constant 0.00833333377 : f32
    %49 = vector.broadcast %cst_10 : f32 to vector<8x128xf32>
    %50 = arith.addf %48, %49 : vector<8x128xf32>
    %51 = arith.mulf %50, %40 : vector<8x128xf32>
    %cst_11 = arith.constant -0.166666672 : f32
    %52 = vector.broadcast %cst_11 : f32 to vector<8x128xf32>
    %53 = arith.addf %51, %52 : vector<8x128xf32>
    %54 = arith.mulf %40, %53 : vector<8x128xf32>
    %55 = arith.mulf %39, %54 : vector<8x128xf32>
    %56 = arith.addf %39, %55 : vector<8x128xf32>
    %cst_12 = arith.constant 2.08767559E-9 : f32
    %57 = vector.broadcast %cst_12 : f32 to vector<8x128xf32>
    %58 = arith.mulf %57, %40 : vector<8x128xf32>
    %cst_13 = arith.constant -2.755732E-7 : f32
    %59 = vector.broadcast %cst_13 : f32 to vector<8x128xf32>
    %60 = arith.addf %58, %59 : vector<8x128xf32>
    %61 = arith.mulf %60, %40 : vector<8x128xf32>
    %cst_14 = arith.constant 2.48015876E-5 : f32
    %62 = vector.broadcast %cst_14 : f32 to vector<8x128xf32>
    %63 = arith.addf %61, %62 : vector<8x128xf32>
    %64 = arith.mulf %63, %40 : vector<8x128xf32>
    %cst_15 = arith.constant -0.00138888892 : f32
    %65 = vector.broadcast %cst_15 : f32 to vector<8x128xf32>
    %66 = arith.addf %64, %65 : vector<8x128xf32>
    %67 = arith.mulf %66, %40 : vector<8x128xf32>
    %cst_16 = arith.constant 0.0416666679 : f32
    %68 = vector.broadcast %cst_16 : f32 to vector<8x128xf32>
    %69 = arith.addf %67, %68 : vector<8x128xf32>
    %70 = arith.mulf %69, %40 : vector<8x128xf32>
    %cst_17 = arith.constant -5.000000e-01 : f32
    %71 = vector.broadcast %cst_17 : f32 to vector<8x128xf32>
    %72 = arith.addf %70, %71 : vector<8x128xf32>
    %73 = arith.mulf %40, %72 : vector<8x128xf32>
    %cst_18 = arith.constant 1.000000e+00 : f32
    %74 = vector.broadcast %cst_18 : f32 to vector<8x128xf32>
    %75 = arith.addf %74, %73 : vector<8x128xf32>
    %76 = arith.mulf %37, %56 : vector<8x128xf32>
    %c0_19 = arith.constant 0 : index
    %c0_20 = arith.constant 0 : index
    %77 = vector.load %arg3[%c0_19, %c0_20] : memref<8x256xf32, #tpu.memory_space<vmem>>, vector<8x128xf32>
    tpu.vector_store %arg3[%c0_19, %c0_20], %76 {strides = array<i32>} : memref<8x256xf32, #tpu.memory_space<vmem>>, vector<8x128xf32>,
    %78 = arith.mulf %37, %75 : vector<8x128xf32>
    %c0_21 = arith.constant 0 : index
    %c128 = arith.constant 128 : index
    %79 = vector.load %arg3[%c0_21, %c128] : memref<8x256xf32, #tpu.memory_space<vmem>>, vector<8x128xf32>
    tpu.vector_store %arg3[%c0_21, %c128], %78 {strides = array<i32>} : memref<8x256xf32, #tpu.memory_space<vmem>>, vector<8x128xf32>,
    return
  }
  func.func @transform_0(%arg0: i32) -> (i32, i32) {
    %c0_i32 = arith.constant 0 : i32
    %c0_i32_0 = arith.constant 0 : i32
    return %arg0, %c0_i32 : i32, i32
  }
  func.func @transform_1(%arg0: i32) -> (i32, i32) {
    %c0_i32 = arith.constant 0 : i32
    %c0_i32_0 = arith.constant 0 : i32
    %c0_i32_1 = arith.constant 0 : i32
    return %c0_i32, %c0_i32_0 : i32, i32
  }
  func.func @transform_2(%arg0: i32) -> (i32, i32) {
    %c0_i32 = arith.constant 0 : i32
    %c0_i32_0 = arith.constant 0 : i32
    return %arg0, %c0_i32 : i32, i32
  }
}

</mosaic_0001>

<bundles_post_ra>
// kernel: tpu_custom_call.1
= control target key start
LH: loop header
LB: loop body
LE: loop exit
PB: predicated region body
PF: predicated region fallthrough
CT: control target
= control target key end

     0   :  { %7 = vsyncpa [#allocation3], 0  ;;  %s542_s0 = inlined_call_operand.vmem [shape: f32[16,4], index: 0, kind: input, shape index: {}]   ;;  %s543_s1 = inlined_call_operand.vmem [shape: f32[4,128], index: 1, kind: input, shape index: {}]   ;;  %s544_s2 = inlined_call_operand.hbm [shape: f32[16,256], index: 2, kind: output, shape index: {}]  }
   0x1   :  { %9 = vsyncpa [#allocation3 + $0x1], 0  ;;  %s439_s9 = smov 0   ;;  %s441_s10 = smov 0  }
   0x2   :  { %s443_s11 = smov 0   ;;  %s445_s12 = smov 0  }
   0x3 LB: > { %s460_s13 = sadd.s32 4294967295, %s417_s12   ;;  %s293_s14 = sadd.s32 4294967294, %s417_s12   ;;  %s417_s12 = sphi %s445_s12, %s550_s12   ;;  %s413_s11 = sphi %s443_s11, %s549_s11   ;;  %s409_s10 = sphi %s441_s10, %s548_s10   ;;  %s405_s9 = sphi %s439_s9, %s547_s9  }
   0x4   : > { %s464_s15 = sadd.s32 1, %s417_s12   ;;  %s69_s16 = sadd.s32 1, %s413_s11 }
   0x5   : > { %s66_s17 = ssub.s32 %s417_s12, %s464_s15  ;;  %p79_p0 = scmp.ne.s32.totalorder %s413_s11, %s409_s10 }
   0x6   : > { %p67_p1 = scmp.eq.s32.totalorder %s66_s17, 0  ;;  %p80_p2 = scmp.eq.s32.totalorder %s460_s13, 1 }
   0x7   : > { %p85_p3 = scmp.ne.s32.totalorder %s409_s10, %s405_s9  ;;  %p86_p4 = scmp.eq.s32.totalorder %s293_s14, 1 }
   0x8   : > { %s475_s18 = scalar_select %p67_p1, %s413_s11, %s69_s16  }
   0x9   : > { %p477_p5 = por %p80_p2, %p79_p0  ;;  %p481_p6 = por %p86_p4, %p85_p3 }
   0xa   : > { %p296_p7 = scmp.ge.s32.totalorder %s417_s12, 1  ;;  %p114_p8 = scmp.lt.s32.totalorder %s417_s12, 3 }
   0xc   : > { %p115_p9 = pnand %p296_p7, %p114_p8 }
   0xd   : > { %p135_p10 = scmp.lt.s32.totalorder (!%p115_p9), %s460_s13, 1  ;;  %v419_v0 = vmov (!%p115_p9), 0   ;;  %v420_v1 = vmov (!%p115_p9), 2   ;;  %v421_v3 = vmov (!%p115_p9), 1   ;;  %v422_v4 = vmov (!%p115_p9), 3   ;;  %s132_s28 = sand.u32 (!%p115_p9), 1, %s409_s10  }
   0xe   : > { %118 = sbr.rel (%p115_p9) target bundleno = 223 (0xdf), region = 28  ;;  %350 = vset.pattern.permute.xlu0 (!%p115_p9), %v419_v0  ;;  %352 = vset.pattern.permute.xlu1 (!%p115_p9), %v420_v1  ;;  %v146_v5 = vlaneseq (!%p115_p9)  ;;  %v140_v9 = vld [vmem:[%s543_s1] sm:$0xf] (!%p115_p9)  ;;  %s297_s29 = sshll.u32 (!%p115_p9), %s132_s28, 4 }
   0xf   : > { %s304_s30 = sshll.u32 (!%p115_p9), %s460_s13, 8  ;;  %s134_s3 = scalar_lea.vmem (!%p115_p9), [#allocation2], %s297_s29 }
  0x10   : > { %v147_v6 = vshrl.u32 (!%p115_p9), %v146_v5, 7  ;;  %s234_s4 = sshll.u32 (!%p115_p9), %s134_s3, 4  ;;  %s500_s7 = scalar_lea.hbm (!%p115_p9), %s544_s2, %s304_s30  ;;  %s502_s4 = int_to_ptr.vmem [resolvable:$true] %s234_s4 }
  0x11   : > { %s220_s8 = scalar_lea.sflag (!%p115_p9), [#allocation3], %s132_s28  ;;  %s355_s14 = scalar_lea.vmem (!%p115_p9), %s502_s4, 256 }
  0x12   : > { %v148_v7 = vsub.s32 (!%p115_p9), 0, %v147_v6  ;;  %v157_v8 = vsub.s32 (!%p115_p9), 1, %v147_v6  ;;  %v167_v11 = vsub.s32 (!%p115_p9), 2, %v147_v6  ;;  %v177_v13 = vsub.s32 (!%p115_p9), 3, %v147_v6  ;;  %p356_p11 = scmp.ne.s32.totalorder (!%p115_p9), %s502_s4, %s355_s14 }
  0x14   : > { %v149_v14 = vrot.slane (!%p115_p9), %v140_v9, %v148_v7  ;;  %v158_v15 = vrot.slane (!%p115_p9), %v140_v9, %v157_v8  ;;  %v168_v16 = vrot.slane (!%p115_p9), %v140_v9, %v167_v11  ;;  %v178_v17 = vrot.slane (!%p115_p9), %v140_v9, %v177_v13  ;;  %p357_p12 = pnand (!%p115_p9), %p356_p11, %p477_p5 }
  0x15   : > { %s136_s21 = scalar_select %p135_p10, %s460_s13, 1 }
  0x16   : > { %p358_p13 = pneg %p357_p12  ;;  %s423_s13 = smov [#allocation2]  }
  0x17   : > { %s298_s22 = sshll.u32 %s136_s21, 3  ;;  %s359_s16 = sshll.u32 %s423_s13, 4  ;;  %s360_s16 = int_to_ptr.vmem [resolvable:$false] %s359_s16 }
  0x18   : > { %s138_s25 = scalar_lea.vmem %s542_s0, %s298_s22  ;;  %s361_s17 = scalar_lea.vmem %s360_s16, 512 }
  0x19   : > { %v139_v2 = vld [vmem:[%s138_s25] sm:$0xff]  ;;  %p362_p0 = scmp.lt.s32.totalorder %s502_s4, %s360_s16  ;;  %p363_p1 = scmp.lt.s32.totalorder %s361_s17, %s355_s14 }
  0x1a   : > { %143 = vperm.xlu0 %350, %v139_v2   ;;  %162 = vperm.xlu1 %352, %v139_v2  }
  0x1b   : > { %p364_p2 = por %p363_p1, %p362_p0 }
  0x1d   : > { %p365_p3 = pnand %p364_p2, %p358_p13 }
  0x1e   : > { %351 = vset.pattern.permute.xlu0 %v421_v3  ;;  %353 = vset.pattern.permute.xlu1 %v422_v4 }
  0x1f   : > { %152 = vperm.xlu0 %351, %v139_v2   ;;  %172 = vperm.xlu1 %353, %v139_v2  }
  0x23   : > { %354 = vset.pattern.permute.xlu0 %v422_v4 }
  0x99   : > { %v144_v10 = vpop.permute.xlu0 %143  ;;  %v163_v12 = vpop.permute.xlu1 %162 }
  0x9a   : > { %v150_v20 = vmul.f32 %v149_v14, %v144_v10  ;;  %v169_v22 = vmul.f32 %v168_v16, %v163_v12 }
  0x9e   : > { %v153_v18 = vpop.permute.xlu0 %152  ;;  %v173_v19 = vpop.permute.xlu1 %172 }
  0x9f   : > { %v159_v21 = vmul.f32 %v158_v15, %v153_v18  ;;  %v179_v24 = vmul.f32 %v178_v17, %v173_v19 }
  0xa1   : > { %v160_v23 = vadd.f32 %v159_v21, %v150_v20 }
  0xa3   : > { %v170_v25 = vadd.f32 %v169_v22, %v160_v23 }
  0xa5   : > { %v180_v26 = vadd.f32 %v179_v24, %v170_v25 }
  0xa7   : > { %v305_v27 = vround.rtne.f32 %v180_v26 }
  0xa9   : > { %v182_v28 = vsub.f32 %v180_v26, %v305_v27 }
  0xab   : > { %v183_v29 = vmul.f32 2.0, %v182_v28 }
  0xad   : > { %v306_v30 = vround.rtne.f32 %v183_v29 }
  0xaf   : > { %v185_v31 = vmul.f32 0.5, %v306_v30  ;;  %v187_v47 = vand.u32 2147483647, %v306_v30 }
  0xb1   : > { %v186_v32 = vsub.f32 %v182_v28, %v185_v31  ;;  %v188_v52 = vmul.f32 2.0, %v187_v47 }
  0xb3   : > { %v190_v33 = vmul.f32 6.2831855, %v186_v32  ;;  %v189_v57 = vsub.f32 1.0, %v188_v52 }
  0xb5   : > { %v191_v34 = vmul.f32 %v190_v33, %v190_v33 }
  0xb7   : > { %v192_v35 = vmul.f32 -2.5052108e-08, %v191_v34  ;;  %v203_v36 = vmul.f32 2.0876756e-09, %v191_v34 }
  0xb9   : > { %v193_v37 = vadd.f32 2.7557319e-06, %v192_v35  ;;  %v204_v38 = vadd.f32 -2.755732e-07, %v203_v36 }
  0xbb   : > { %v194_v39 = vmul.f32 %v193_v37, %v191_v34  ;;  %v205_v40 = vmul.f32 %v204_v38, %v191_v34 }
  0xbd   : > { %v195_v41 = vadd.f32 -0.0001984127, %v194_v39  ;;  %v206_v42 = vadd.f32 2.4801588e-05, %v205_v40 }
  0xbf   : > { %v196_v43 = vmul.f32 %v195_v41, %v191_v34  ;;  %v207_v44 = vmul.f32 %v206_v42, %v191_v34 }
  0xc1   : > { %v197_v45 = vadd.f32 0.008333334, %v196_v43  ;;  %v208_v46 = vadd.f32 -0.0013888889, %v207_v44 }
  0xc3   : > { %v198_v48 = vmul.f32 %v197_v45, %v191_v34  ;;  %v209_v49 = vmul.f32 %v208_v46, %v191_v34 }
  0xc5   : > { %v199_v50 = vadd.f32 -0.16666667, %v198_v48  ;;  %v210_v51 = vadd.f32 0.041666668, %v209_v49 }
  0xc7   : > { %v200_v53 = vmul.f32 %v199_v50, %v191_v34  ;;  %v211_v54 = vmul.f32 %v210_v51, %v191_v34 }
  0xc9   : > { %v201_v55 = vmul.f32 %v200_v53, %v190_v33  ;;  %v212_v56 = vadd.f32 -0.5, %v211_v54 }
  0xcb   : > { %v202_v58 = vadd.f32 %v201_v55, %v190_v33  ;;  %v213_v59 = vmul.f32 %v212_v56, %v191_v34 }
  0xcd   : > { %v214_v60 = vadd.f32 1.0, %v213_v59  ;;  %v215_v61 = vmul.f32 %v202_v58, %v189_v57 }
  0xcf   : > { %216 = vst [vmem:[%s134_s3] sm:$0xff] %v215_v61  ;;  %v217_v62 = vmul.f32 %v214_v60, %v189_v57 }
  0xd1   : > { %218 = vst [vmem:[%s134_s3 + $0x8] sm:$0xff] %v217_v62 }
  0xd2   : > { %368 = shalt.err (!%p365_p3)
}
  0xd3   : > { %s369_s21 = scalar_lea.hbm %s500_s7, 256  ;;  %s373_s24 = scalar_lea.hbm %s544_s2, 512 }
  0xd4   : > { %p370_p4 = scmp.ne.s32.totalorder %s500_s7, %s369_s21  ;;  %p374_p9 = scmp.lt.u32.totalorder %s500_s7, %s544_s2 }
  0xd5   : > { %p375_p10 = scmp.lt.u32.totalorder %s373_s24, %s369_s21  ;;  %p377_p12 = scmp.lt.u32.totalorder %s369_s21, %s500_s7 }
  0xd6   : > { %p371_p7 = pnand %p370_p4, %p477_p5 }
  0xd7   : > { %p376_p11 = por %p375_p10, %p374_p9 }
  0xd8   : > { %p372_p8 = pneg %p371_p7 }
  0xd9   : > { %p378_p13 = por %p377_p12, %p376_p11 }
  0xdb   : > { %p379_p0 = pnand %p378_p13, %p372_p8 }
  0xdd   : > { %382 = shalt.err (!%p379_p0)
}
  0xde   : > { %307 = dma.vmem_to_hbm [thread:$0]  (%p477_p5), %s502_s4, 256, %s500_s7, %s220_s8  }
  0xdf PF: > { %p313_p1 = scmp.ge.s32.totalorder %s417_s12, 2  ;;  %s246_s27 = sand.u32 1, %s405_s9  }
  0xe0   : > { %s247_s28 = scalar_lea.sflag [#allocation3], %s246_s27 }
  0xe1   : > { %p310_p2 = pnand %p313_p1, %p481_p6 }
  0xe3   : > { %400 = dma.done.wait (!%p310_p2), %s247_s28, 256  }
  0xe4   : > { %402 = vsyncadd (!%p310_p2), %s247_s28, 4294967040  ;;  %p12_p3 = scmp.ge.s32.totalorder %s464_s15, 4   ;;  %s547_s9 = smov %s409_s10 }
  0xe5   : > { %s548_s10 = smov %s413_s11  ;;  %s549_s11 = smov %s475_s18 }
  0xe6   : > { %s550_s12 = smov %s464_s15  ;;  %14 = sbr.rel (!%p12_p3) target bundleno = 3 (0x3), region = 63 }
  0xed   :  { %252 = vsyncpa [#allocation3], 1 }
  0xee   :  { %254 = vsyncpa [#allocation3 + $0x1], 1 }

</bundles_post_ra>
